<compile_context>
chip_gen: v5e
topology: v5e:2x2
jax: 0.10.0
libtpu: 0.0.40
codegen_flags: <defaults>
</compile_context>

<pallas_src>
import functools

import jax
import jax.numpy as jnp
from jax.experimental import pallas as pl
from jax.experimental.pallas import tpu as pltpu


# ----------------------------------------------------------------------------
# Fused single-pass kernel: squeeze + excite + scale on one NCT batch tile.
# ----------------------------------------------------------------------------
def se_connect_nct_kernel(x_ref, w1_ref, b1_ref, w2_ref, b2_ref, o_ref):
    # x_ref: (tb, C, T), native dtype. Channels on sublanes, time on lanes.
    inv_t = jnp.float32(1.0 / x_ref.shape[2])

    # Squeeze: temporal mean = cross-lane reduce (XLU; free while DMA-bound),
    # f32 accumulation. First, independent streaming read of the tile.
    m = jnp.sum(x_ref[...], axis=2, dtype=jnp.float32) * inv_t          # (tb, C)

    # Excitation: two tiny dense layers on the MXU (hidden under the tile DMA).
    h = jnp.dot(m, w1_ref[...], preferred_element_type=jnp.float32) + b1_ref[...]
    h = jnp.maximum(h, 0.0)                                              # (tb, D)
    s = jnp.dot(h, w2_ref[...], preferred_element_type=jnp.float32) + b2_ref[...]
    s = jax.nn.sigmoid(s)                                                # (tb, C)

    # Scale: gate broadcast along lanes (time). Second independent read of the
    # tile so the whole multi-MiB block is never one long-lived value.
    gate = s.astype(o_ref.dtype)[:, :, None]                             # (tb, C, 1)
    o_ref[...] = x_ref[...] * gate


# ----------------------------------------------------------------------------
# T-tiled fallback (only when a single (1, C, T) row does not fit VMEM).
# Pass 1: temporal-sum accumulator + excitation -> gate. Pass 2: scale.
# ----------------------------------------------------------------------------
def _se_gate_ttiled_kernel(x_ref, w1_ref, b1_ref, w2_ref, b2_ref, gate_ref,
                           acc_ref, *, t_total, t_tile, mask_tail):
    j = pl.program_id(1)

    @pl.when(j == 0)
    def _():
        acc_ref[...] = jnp.zeros_like(acc_ref)

    x = x_ref[...]                                                       # (tb, C, tt)
    if mask_tail:
        # Last time chunk may run past T: zero the out-of-range lanes.
        t_idx = j * t_tile + jax.lax.broadcasted_iota(jnp.int32, x.shape, 2)
        x = jnp.where(t_idx < t_total, x, jnp.zeros_like(x))
    acc_ref[...] += jnp.sum(x, axis=2, dtype=jnp.float32)                # (tb, C)

    @pl.when(j == pl.num_programs(1) - 1)
    def _():
        m = acc_ref[...] * jnp.float32(1.0 / t_total)
        h = jnp.dot(m, w1_ref[...], preferred_element_type=jnp.float32) + b1_ref[...]
        h = jnp.maximum(h, 0.0)
        s = jax.nn.sigmoid(
            jnp.dot(h, w2_ref[...], preferred_element_type=jnp.float32) + b2_ref[...])
        gate_ref[...] = s[:, :, None].astype(gate_ref.dtype)             # (tb, C, 1)


def _se_scale_ttiled_kernel(x_ref, gate_ref, o_ref):
    # (tb, C, tt) * (tb, C, 1): gate broadcast along lanes.
    o_ref[...] = x_ref[...] * gate_ref[...].astype(o_ref.dtype)


# ----------------------------------------------------------------------------
# Per-generation VMEM plan and tile selection.
# ----------------------------------------------------------------------------
def _tpu_vmem_capacity_bytes():
    try:
        info = pltpu.get_tpu_info()
        cap = getattr(info, "vmem_capacity_bytes", None)
        if cap:
            return int(cap)
    except Exception:
        pass
    return 64 * 1024 * 1024  # conservative default (v7x per-TensorCore VMEM)


def _vmem_plan():
    cap = _tpu_vmem_capacity_bytes()            # 128 MiB v5e/v6e, 64 MiB/TC v7x
    vmem_limit = min(96 * 1024 * 1024, (cap * 3) // 4)   # ~96 MiB v5e/v6e, 48 MiB v7x
    budget = (vmem_limit * 2) // 3                        # x-tile budget; headroom for weights
    prefer_steps = 4 if cap <= 64 * 1024 * 1024 else 2    # small-VMEM chips (v7x) = 2 TCs
    return vmem_limit, budget, prefer_steps


def _pick_batch_tile(B, row_bytes, budget_bytes, *, prefer_steps=2,
                     target_tile_bytes=2 * 1024 * 1024):
    """Largest divisor of B whose double-buffered in+out tiles fit the budget.
    Preferences (in order): >=2 grid steps (pipelining + megacore work), a
    per-step x tile >= ~2 MiB (amortize ~0.35us/step), >=prefer_steps steps
    (v7x: several steps per TensorCore), an even step count (balanced megacore
    split), then the largest tile.  Returns None if even tb=1 does not fit."""
    max_tb = budget_bytes // (4 * row_bytes)    # 2 buffers x (in + out)
    if max_tb < 1:
        return None
    cands = [d for d in range(1, B + 1) if B % d == 0 and d <= max_tb]
    best_fit = max(cands)

    def score(d):
        steps = B // d
        return (
            steps >= 2,
            d * row_bytes >= target_tile_bytes or d == best_fit,
            steps >= prefer_steps,
            steps % 2 == 0,
            d,
        )

    return max(cands, key=score)


# ----------------------------------------------------------------------------
# pallas_call wrappers.
# ----------------------------------------------------------------------------
def _se_connect_nct_fused(x, w1, b1, w2, b2, *, tb, vmem_limit_bytes, donate_x):
    B, C, T = x.shape
    D = w1.shape[1]
    itemsize = jnp.dtype(x.dtype).itemsize
    return pl.pallas_call(
        se_connect_nct_kernel,
        out_shape=jax.ShapeDtypeStruct((B, C, T), x.dtype),
        grid_spec=pltpu.PrefetchScalarGridSpec(
            num_scalar_prefetch=0,
            grid=(B // tb,),
            in_specs=[
                pl.BlockSpec((tb, C, T), lambda i: (i, 0, 0)),   # x batch tile
                pl.BlockSpec((C, D), lambda i: (0, 0)),          # w1 (resident)
                pl.BlockSpec((1, D), lambda i: (0, 0)),          # b1
                pl.BlockSpec((D, C), lambda i: (0, 0)),          # w2
                pl.BlockSpec((1, C), lambda i: (0, 0)),          # b2
            ],
            out_specs=pl.BlockSpec((tb, C, T), lambda i: (i, 0, 0)),
        ),
        compiler_params=pltpu.CompilerParams(
            dimension_semantics=("parallel",),                   # megacore on v7x
            vmem_limit_bytes=vmem_limit_bytes,
        ),
        cost_estimate=pl.CostEstimate(
            flops=int(2 * B * C * T + 4 * B * C * D),
            transcendentals=int(B * C),
            bytes_accessed=int(2 * B * C * T * itemsize),
        ),
        input_output_aliases=({0: 0} if donate_x else {}),
    )(x, w1, b1, w2, b2)


def _se_connect_nct_ttiled(x, w1, b1, w2, b2, *, tb, t_tile, vmem_limit_bytes):
    """Two-pass fallback for rows too large for VMEM. t_tile must be a multiple
    of 128 (lane-aligned time chunks)."""
    B, C, T = x.shape
    D = w1.shape[1]
    itemsize = jnp.dtype(x.dtype).itemsize
    nb, nt = B // tb, pl.cdiv(T, t_tile)
    mask_tail = (T % t_tile) != 0

    gate = pl.pallas_call(
        functools.partial(_se_gate_ttiled_kernel,
                          t_total=T, t_tile=t_tile, mask_tail=mask_tail),
        out_shape=jax.ShapeDtypeStruct((B, C, 1), jnp.float32),
        grid_spec=pltpu.PrefetchScalarGridSpec(
            num_scalar_prefetch=0,
            grid=(nb, nt),
            in_specs=[
                pl.BlockSpec((tb, C, t_tile), lambda i, j: (i, 0, j)),
                pl.BlockSpec((C, D), lambda i, j: (0, 0)),
                pl.BlockSpec((1, D), lambda i, j: (0, 0)),
                pl.BlockSpec((D, C), lambda i, j: (0, 0)),
                pl.BlockSpec((1, C), lambda i, j: (0, 0)),
            ],
            out_specs=pl.BlockSpec((tb, C, 1), lambda i, j: (i, 0, 0)),
            scratch_shapes=[pltpu.VMEM((tb, C), jnp.float32)],
        ),
        compiler_params=pltpu.CompilerParams(
            dimension_semantics=("parallel", "arbitrary"),       # reduce over time
            vmem_limit_bytes=vmem_limit_bytes,
        ),
    )(x, w1, b1, w2, b2)

    return pl.pallas_call(
        _se_scale_ttiled_kernel,
        out_shape=jax.ShapeDtypeStruct((B, C, T), x.dtype),
        grid_spec=pltpu.PrefetchScalarGridSpec(
            num_scalar_prefetch=0,
            grid=(nb, nt),
            in_specs=[
                pl.BlockSpec((tb, C, t_tile), lambda i, j: (i, 0, j)),
                pl.BlockSpec((tb, C, 1), lambda i, j: (i, 0, 0)),
            ],
            out_specs=pl.BlockSpec((tb, C, t_tile), lambda i, j: (i, 0, j)),
        ),
        compiler_params=pltpu.CompilerParams(
            dimension_semantics=("parallel", "parallel"),
            vmem_limit_bytes=vmem_limit_bytes,
        ),
        cost_estimate=pl.CostEstimate(
            flops=int(B * C * T),
            transcendentals=0,
            bytes_accessed=int(2 * B * C * T * itemsize),
        ),
    )(x, gate)


def se_connect(x, w1, b1, w2, b2, *, donate_x=False):
    """SE_Connect forward.  x: (B, C, T) NCT, exactly like the PyTorch module.
    w1: (C, D), b1: (1, D), w2: (D, C), b2: (1, C)  (Linear weights stored as
    (in_features, out_features)).  Set donate_x=True only when the caller no
    longer needs x (aliases x's HBM buffer with the output)."""
    B, C, T = x.shape
    itemsize = jnp.dtype(x.dtype).itemsize
    vmem_limit, budget, prefer_steps = _vmem_plan()
    tb = _pick_batch_tile(B, C * T * itemsize, budget, prefer_steps=prefer_steps)
    if tb is not None:
        return _se_connect_nct_fused(x, w1, b1, w2, b2, tb=tb,
                                     vmem_limit_bytes=vmem_limit,
                                     donate_x=donate_x)
    # Even a single row does not fit: T-tiled two-pass path (one extra read of x).
    t_tile = max(128, (budget // (4 * C * itemsize)) // 128 * 128)
    return _se_connect_nct_ttiled(x, w1, b1, w2, b2, tb=1, t_tile=t_tile,
                                  vmem_limit_bytes=vmem_limit)


def reference_se_connect(x, w1, b1, w2, b2):
    """Pure-JAX reference matching the PyTorch semantics (x is (B, C, T))."""
    m = jnp.mean(x, axis=2)
    h = jnp.maximum(m @ w1 + b1, 0.0)
    s = jax.nn.sigmoid(h @ w2 + b2)
    return x * s[:, :, None]


if __name__ == "__main__":
    # SE_Connect(channels=64, se_bottleneck_dim=32) at small shapes.
    B, C, T = 2, 64, 16
    D = 32

    key = jax.random.PRNGKey(0)
    kx, k1, k2, k3, k4 = jax.random.split(key, 5)

    x = jax.random.normal(kx, (B, C, T), dtype=jnp.float32)
    w1 = jax.random.normal(k1, (C, D), dtype=jnp.float32) * (1.0 / jnp.sqrt(C))
    b1 = jax.random.normal(k2, (1, D), dtype=jnp.float32) * 0.01
    w2 = jax.random.normal(k3, (D, C), dtype=jnp.float32) * (1.0 / jnp.sqrt(D))
    b2 = jax.random.normal(k4, (1, C), dtype=jnp.float32) * 0.01

    ref = reference_se_connect(x, w1, b1, w2, b2)

    # 1) fused NCT-native path (the normal path).
    out = jax.block_until_ready(se_connect(x, w1, b1, w2, b2))
    assert out.shape == (B, C, T)
    assert jnp.allclose(out, ref, atol=1e-5, rtol=1e-5), "fused path mismatch"

    # 2) bf16 tolerance check (gate is cast to bf16 and the scale multiply runs
    #    in bf16 by design; mean stays f32-accumulated).
    xb = x.astype(jnp.bfloat16)
    refb = reference_se_connect(xb.astype(jnp.float32), w1, b1, w2, b2)
    outb = jax.block_until_ready(se_connect(xb, w1, b1, w2, b2))
    assert jnp.allclose(outb.astype(jnp.float32), refb, atol=2e-2, rtol=2e-2), \
        "bf16 fused path mismatch"

    # 3) T-tiled two-pass fallback, forced at small shapes (t_tile=128 over T=256).
    T2 = 256
    x2 = jax.random.normal(kx, (B, C, T2), dtype=jnp.float32)
    ref2 = reference_se_connect(x2, w1, b1, w2, b2)
    out2 = jax.block_until_ready(
        _se_connect_nct_ttiled(x2, w1, b1, w2, b2, tb=1, t_tile=128,
                               vmem_limit_bytes=32 * 1024 * 1024))
    assert jnp.allclose(out2, ref2, atol=1e-5, rtol=1e-5), "T-tiled path mismatch"

    print("KERNEL_OK")
</pallas_src>

<mosaic_0001>
module attributes {stable_mosaic.version = 11 : i64} {
  func.func @se_connect_nct_kernel(%arg0: i32, %arg1: memref<1x64x16xf32, #tpu.memory_space<vmem>>, %arg2: memref<64x32xf32, #tpu.memory_space<vmem>>, %arg3: memref<1x32xf32, #tpu.memory_space<vmem>>, %arg4: memref<32x64xf32, #tpu.memory_space<vmem>>, %arg5: memref<1x64xf32, #tpu.memory_space<vmem>>, %arg6: memref<1x64x16xf32, #tpu.memory_space<vmem>>) attributes {dimension_semantics = [#tpu.dimension_semantics<parallel>], iteration_bounds = array<i64: 2>, scalar_prefetch = 0 : i64, scratch_operands = 0 : i64, tpu.core_type = #tpu.core_type<tc>, window_params = [{transform_indices = @transform_0, window_bounds = array<i64: 1, 64, 16>}, {pipeline_mode = #tpu.pipeline_mode<synchronous>, transform_indices = @transform_1, window_bounds = array<i64: 64, 32>}, {pipeline_mode = #tpu.pipeline_mode<synchronous>, transform_indices = @transform_2, window_bounds = array<i64: 1, 32>}, {pipeline_mode = #tpu.pipeline_mode<synchronous>, transform_indices = @transform_3, window_bounds = array<i64: 32, 64>}, {pipeline_mode = #tpu.pipeline_mode<synchronous>, transform_indices = @transform_4, window_bounds = array<i64: 1, 64>}, {transform_indices = @transform_5, window_bounds = array<i64: 1, 64, 16>}]} {
    %c0 = arith.constant 0 : index
    %c0_0 = arith.constant 0 : index
    %c0_1 = arith.constant 0 : index
    %0 = vector.load %arg1[%c0, %c0_0, %c0_1] : memref<1x64x16xf32, #tpu.memory_space<vmem>>, vector<1x64x16xf32>
    %cst = arith.constant dense<0.000000e+00> : vector<1x64xf32>
    %1 = vector.multi_reduction <add>, %0, %cst [2] : vector<1x64x16xf32> to vector<1x64xf32>
    %cst_2 = arith.constant 6.250000e-02 : f32
    %2 = vector.broadcast %cst_2 : f32 to vector<1x64xf32>
    %3 = arith.mulf %1, %2 : vector<1x64xf32>
    %c0_3 = arith.constant 0 : index
    %c0_4 = arith.constant 0 : index
    %4 = vector.load %arg2[%c0_3, %c0_4] : memref<64x32xf32, #tpu.memory_space<vmem>>, vector<64x32xf32>
    %cst_5 = arith.constant dense<0.000000e+00> : vector<1x32xf32>
    %5 = tpu.matmul %3, %4, %cst_5 {dimension_numbers = #tpu.dot_dimension_numbers<[1], [0], [0], [1], [0, 0, 1, 1], [], []>} : vector<1x64xf32>, vector<64x32xf32>, vector<1x32xf32> -> vector<1x32xf32>
    %c0_6 = arith.constant 0 : index
    %c0_7 = arith.constant 0 : index
    %6 = vector.load %arg3[%c0_6, %c0_7] : memref<1x32xf32, #tpu.memory_space<vmem>>, vector<1x32xf32>
    %7 = arith.addf %5, %6 : vector<1x32xf32>
    %cst_8 = arith.constant 0.000000e+00 : f32
    %8 = vector.broadcast %cst_8 : f32 to vector<1x32xf32>
    %9 = arith.maximumf %7, %8 : vector<1x32xf32>
    %c0_9 = arith.constant 0 : index
    %c0_10 = arith.constant 0 : index
    %10 = vector.load %arg4[%c0_9, %c0_10] : memref<32x64xf32, #tpu.memory_space<vmem>>, vector<32x64xf32>
    %cst_11 = arith.constant dense<0.000000e+00> : vector<1x64xf32>
    %11 = tpu.matmul %9, %10, %cst_11 {dimension_numbers = #tpu.dot_dimension_numbers<[1], [0], [0], [1], [0, 0, 1, 1], [], []>} : vector<1x32xf32>, vector<32x64xf32>, vector<1x64xf32> -> vector<1x64xf32>
    %c0_12 = arith.constant 0 : index
    %c0_13 = arith.constant 0 : index
    %12 = vector.load %arg5[%c0_12, %c0_13] : memref<1x64xf32, #tpu.memory_space<vmem>>, vector<1x64xf32>
    %13 = arith.addf %11, %12 : vector<1x64xf32>
    %14 = arith.negf %13 : vector<1x64xf32>
    %15 = math.exp %14 : vector<1x64xf32>
    %cst_14 = arith.constant 1.000000e+00 : f32
    %16 = vector.broadcast %cst_14 : f32 to vector<1x64xf32>
    %17 = arith.addf %16, %15 : vector<1x64xf32>
    %18 = arith.divf %16, %17 : vector<1x64xf32>
    %19 = vector.shape_cast %18 : vector<1x64xf32> to vector<1x64x1xf32>
    %c0_15 = arith.constant 0 : index
    %c0_16 = arith.constant 0 : index
    %c0_17 = arith.constant 0 : index
    %20 = vector.load %arg1[%c0_15, %c0_16, %c0_17] : memref<1x64x16xf32, #tpu.memory_space<vmem>>, vector<1x64x16xf32>
    %21 = vector.broadcast %19 : vector<1x64x1xf32> to vector<1x64x16xf32>
    %22 = arith.mulf %20, %21 : vector<1x64x16xf32>
    %c0_18 = arith.constant 0 : index
    %c0_19 = arith.constant 0 : index
    %c0_20 = arith.constant 0 : index
    %23 = vector.load %arg6[%c0_18, %c0_19, %c0_20] : memref<1x64x16xf32, #tpu.memory_space<vmem>>, vector<1x64x16xf32>
    tpu.vector_store %arg6[%c0_18, %c0_19, %c0_20], %22 {strides = array<i32>} : memref<1x64x16xf32, #tpu.memory_space<vmem>>, vector<1x64x16xf32>,
    return
  }
  func.func @transform_0(%arg0: i32) -> (i32, i32, i32) {
    %c0_i32 = arith.constant 0 : i32
    %c0_i32_0 = arith.constant 0 : i32
    %c0_i32_1 = arith.constant 0 : i32
    return %arg0, %c0_i32, %c0_i32_0 : i32, i32, i32
  }
  func.func @transform_1(%arg0: i32) -> (i32, i32) {
    %c0_i32 = arith.constant 0 : i32
    %c0_i32_0 = arith.constant 0 : i32
    %c0_i32_1 = arith.constant 0 : i32
    return %c0_i32, %c0_i32_0 : i32, i32
  }
  func.func @transform_2(%arg0: i32) -> (i32, i32) {
    %c0_i32 = arith.constant 0 : i32
    %c0_i32_0 = arith.constant 0 : i32
    %c0_i32_1 = arith.constant 0 : i32
    return %c0_i32, %c0_i32_0 : i32, i32
  }
  func.func @transform_3(%arg0: i32) -> (i32, i32) {
    %c0_i32 = arith.constant 0 : i32
    %c0_i32_0 = arith.constant 0 : i32
    %c0_i32_1 = arith.constant 0 : i32
    return %c0_i32, %c0_i32_0 : i32, i32
  }
  func.func @transform_4(%arg0: i32) -> (i32, i32) {
    %c0_i32 = arith.constant 0 : i32
    %c0_i32_0 = arith.constant 0 : i32
    %c0_i32_1 = arith.constant 0 : i32
    return %c0_i32, %c0_i32_0 : i32, i32
  }
  func.func @transform_5(%arg0: i32) -> (i32, i32, i32) {
    %c0_i32 = arith.constant 0 : i32
    %c0_i32_0 = arith.constant 0 : i32
    %c0_i32_1 = arith.constant 0 : i32
    return %arg0, %c0_i32, %c0_i32_0 : i32, i32, i32
  }
}

</mosaic_0001>

<bundles_post_ra>
// kernel: tpu_custom_call.1
= control target key start
LH: loop header
LB: loop body
LE: loop exit
PB: predicated region body
PF: predicated region fallthrough
CT: control target
= control target key end

     0   :  { %s581_s18 = smov 0   ;;  %s695_s0 = inlined_call_operand.vmem [shape: f32[2,64,16], index: 0, kind: input, shape index: {}]   ;;  %s696_s1 = inlined_call_operand.vmem [shape: f32[64,32], index: 1, kind: input, shape index: {}]   ;;  %s697_s2 = inlined_call_operand.vmem [shape: f32[1,32], index: 2, kind: input, shape index: {}]   ;;  %s698_s3 = inlined_call_operand.vmem [shape: f32[32,64], index: 3, kind: input, shape index: {}]   ;;  %s699_s4 = inlined_call_operand.vmem [shape: f32[1,64], index: 4, kind: input, shape index: {}]   ;;  %s700_s5 = inlined_call_operand.vmem [shape: f32[2,64,16], index: 5, kind: output, shape index: {}]  }
   0x1 LB: > { %s506_s19 = sadd.s32 4294967295, %s549_s18   ;;  %p510_p0 = scmp.ge.s32.totalorder %s549_s18, 1  ;;  %s549_s18 = sphi %s581_s18, %s15_s18  }
   0x2   : > { %p187_p1 = scmp.lt.s32.totalorder %s549_s18, 3 }
   0x4   : > { %p188_p2 = pnand %p510_p0, %p187_p1 }
   0x5   : > { %p215_p3 = scmp.lt.s32.totalorder (!%p188_p2), %s506_s19, 1 }
   0x6   : > { %191 = sbr.rel (%p188_p2) target bundleno = 592 (0x250), region = 40 }
   0xb   : > { %s702_s19 = smov (!%p215_p3, %s506_s19), 1  ;;  %vm233_vm0 = vcmask 130048   ;;  %v273_v16 = vld [vmem:[%s696_s1 + $0x38] sm:$0xff]  ;;  %v272_v17 = vld [vmem:[%s696_s1 + $0x30] sm:$0xff]  ;;  %v271_v18 = vld [vmem:[%s696_s1 + $0x28] sm:$0xff]  ;;  %v283_v25 = vlaneseq  ;;  %vm288_vm1 = vcmask 130112  }
   0xc   : > { %s520_s20 = sshll.u32 %s702_s19, 6  ;;  %325 = vmatpush.msra.mxu0 %v273_v16  ;;  %v270_v19 = vld [vmem:[%s696_s1 + $0x20] sm:$0xff]  ;;  %v269_v20 = vld [vmem:[%s696_s1 + $0x18] sm:$0xff]  ;;  %v268_v21 = vld [vmem:[%s696_s1 + $0x10] sm:$0xff]  ;;  %vm292_vm2 = vcmask 195712   ;;  %vm296_vm3 = vcmask 261312  }
   0xd   : > { %s219_s23 = scalar_lea.vmem %s695_s0, %s520_s20  ;;  %v267_v22 = vld [vmem:[%s696_s1 + $0x8] sm:$0xff]  ;;  %v266_v23 = vld [vmem:[%s696_s1] sm:$0xff]  ;;  %v341_v24 = vld [vmem:[%s698_s3 + $0x18] sm:$0xff]  ;;  %v284_v29 = vand.u32 127, %v283_v25  ;;  %vm300_vm4 = vcmask 326912   ;;  %vm304_vm5 = vcmask 392512   ;;  %s224_s7 = scalar_lea.vmem %s700_s5, %s520_s20 }
   0xe   : > { %v597_v0 = vld [vmem:[%s219_s23] sm:$0xff]  ;;  %v599_v1 = vld [vmem:[%s219_s23 + $0x10] sm:$0xff]  ;;  %v609_v6 = vld [vmem:[%s219_s23 + $0x8] sm:$0xff]  ;;  %326 = vmatpush.msra.mxu0 %v272_v17  ;;  %359 = vmatpush.msra.mxu1 %v341_v24  ;;  %vm308_vm6 = vcmask 458112   ;;  %vm312_vm7 = vcmask 523712   ;;  %vm314_vm8 = vcmask 523264  }
   0xf   : > { %v601_v2 = vld [vmem:[%s219_s23 + $0x20] sm:$0xff]  ;;  %v234_v3 = vsel %vm233_vm0, %v597_v0, 0.0  ;;  %v240_v4 = vsel %vm233_vm0, %v599_v1, 0.0  ;;  %v611_v7 = vld [vmem:[%s219_s23 + $0x18] sm:$0xff]  ;;  %v613_v8 = vld [vmem:[%s219_s23 + $0x28] sm:$0xff]  ;;  %v237_v9 = vsel %vm233_vm0, %v609_v6, 0.0 }
  0x10   : > { %v246_v5 = vsel %vm233_vm0, %v601_v2, 0.0  ;;  %235 = vadd.xlane.f32.xlu0 %v234_v3  ;;  %241 = vadd.xlane.f32.xlu1 %v240_v4  ;;  %v243_v10 = vsel %vm233_vm0, %v611_v7, 0.0  ;;  %v249_v11 = vsel %vm233_vm0, %v613_v8, 0.0  ;;  %v621_v12 = vld [vmem:[%s219_s23 + $0x30] sm:$0xff]  ;;  %v623_v13 = vld [vmem:[%s219_s23 + $0x38] sm:$0xff]  ;;  %v286_v31 = vadd.s32 4294967288, %v284_v29 }
  0x11   : > { %247 = vadd.xlane.f32.xlu2 %v246_v5  ;;  %v252_v14 = vsel %vm233_vm0, %v621_v12, 0.0  ;;  %v255_v15 = vsel %vm233_vm0, %v623_v13, 0.0  ;;  %327 = vmatpush.msra.mxu0 %v271_v18  ;;  %v294_v32 = vadd.s32 4294967272, %v284_v29  ;;  %v290_v33 = vadd.s32 4294967280, %v284_v29  ;;  %v340_v4 = vld [vmem:[%s698_s3 + $0x10] sm:$0xff]  ;;  %v339_v5 = vld [vmem:[%s698_s3 + $0x8] sm:$0xff] }
  0x12   : > { %v298_v40 = vadd.s32 4294967264, %v284_v29  ;;  %v302_v46 = vadd.s32 4294967256, %v284_v29  ;;  %v306_v52 = vadd.s32 4294967248, %v284_v29  ;;  %v310_v53 = vadd.s32 4294967240, %v284_v29  ;;  %360 = vmatpush.msra.mxu1 %v340_v4 }
  0x13   : > { %328 = vmatpush.msra.mxu0 %v270_v19  ;;  %vm343_vm9 = vcmask 261120   ;;  %v388_v16 = vshrl.u32 %v283_v25, 7  ;;  %v342_v19 = vld [vmem:[%s699_s4] sm:$0x1] }
  0x14   : > { %361 = vmatpush.msra.mxu1 %v339_v5 }
  0x15   : > { %329 = vmatpush.msra.mxu0 %v269_v20  ;;  %530 = vset.pattern.permute.xlu2 %v388_v16  ;;  %v401_v17 = vadd.s32 16, %v388_v16  ;;  %v395_v18 = vadd.s32 8, %v388_v16 }
  0x17   : > { %330 = vmatpush.msra.mxu0 %v268_v21  ;;  %532 = vset.pattern.permute.xlu1 %v401_v17 }
  0x18   : > { %238 = vadd.xlane.f32.xlu0 %v237_v9  ;;  %244 = vadd.xlane.f32.xlu1 %v243_v10  ;;  %v338_v9 = vld [vmem:[%s698_s3] sm:$0xff] }
  0x19   : > { %250 = vadd.xlane.f32.xlu2 %v249_v11  ;;  %331 = vmatpush.msra.mxu0 %v267_v22  ;;  %v274_v10 = vld [vmem:[%s697_s2] sm:$0x1] }
  0x1a   : > { %362 = vmatpush.msra.mxu1 %v338_v9  ;;  %531 = vset.pattern.permute.xlu0 %v395_v18 }
  0x1b   : > { %332 = vmatpush.msra.mxu0 %v266_v23 }
  0x20   : > { %253 = vadd.xlane.f32.xlu0 %v252_v14  ;;  %256 = vadd.xlane.f32.xlu1 %v255_v15 }
  0x83   : > { %v236_v26 = vpop.xlane.xlu0 %235  ;;  %v242_v27 = vpop.xlane.xlu1 %241 }
  0x84   : > { %v248_v28 = vpop.xlane.xlu2 %247  ;;  %v258_v30 = vmul.f32 0.0625, %v236_v26  ;;  %v260_v34 = vmul.f32 0.0625, %v242_v27 }
  0x85   : > { %v262_v42 = vmul.f32 0.0625, %v248_v28 }
  0x86   : > { %v285_v41 = vperm.slane %v258_v30, %v284_v29  ;;  %v291_v45 = vperm.slane %v260_v34, %v290_v33 }
  0x87   : > { %v299_v50 = vperm.slane %v262_v42, %v298_v40  ;;  %v425_v40 = vadd.s32 48, %v388_v16 }
  0x8b   : > { %v239_v35 = vpop.xlane.xlu0 %238  ;;  %v245_v36 = vpop.xlane.xlu1 %244 }
  0x8c   : > { %v259_v37 = vmul.f32 0.0625, %v239_v35  ;;  %v261_v38 = vmul.f32 0.0625, %v245_v36  ;;  %v251_v39 = vpop.xlane.xlu2 %250  ;;  %v419_v36 = vadd.s32 40, %v388_v16 }
  0x8d   : > { %v263_v47 = vmul.f32 0.0625, %v251_v39  ;;  %v413_v39 = vadd.s32 32, %v388_v16 }
  0x8e   : > { %v287_v43 = vperm.slane %v259_v37, %v286_v31  ;;  %v295_v44 = vperm.slane %v261_v38, %v294_v32  ;;  %v407_v37 = vadd.s32 24, %v388_v16  ;;  %v431_v38 = vadd.s32 56, %v388_v16 }
  0x8f   : > { %v303_v54 = vperm.slane %v263_v47, %v302_v46 }
  0x90   : > { %v289_v48 = vsel %vm288_vm1, %v287_v43, %v285_v41 }
  0x91   : > { %v293_v49 = vsel %vm292_vm2, %v291_v45, %v289_v48 }
  0x92   : > { %v297_v51 = vsel %vm296_vm3, %v295_v44, %v293_v49 }
  0x93   : > { %v254_v55 = vpop.xlane.xlu0 %253  ;;  %v257_v56 = vpop.xlane.xlu1 %256  ;;  %v301_v59 = vsel %vm300_vm4, %v299_v50, %v297_v51 }
  0x94   : > { %v264_v57 = vmul.f32 0.0625, %v254_v55  ;;  %v265_v58 = vmul.f32 0.0625, %v257_v56  ;;  %v305_v62 = vsel %vm304_vm5, %v303_v54, %v301_v59 }
  0x96   : > { %v307_v60 = vperm.slane %v264_v57, %v306_v52  ;;  %v311_v61 = vperm.slane %v265_v58, %v310_v53 }
  0x98   : > { %v309_v63 = vsel %vm308_vm6, %v307_v60, %v305_v62 }
  0x99   : > { %v313_v3 = vsel %vm312_vm7, %v311_v61, %v309_v63 }
  0x9a   : > { %515 = vmatmul.msk.f32.vlgmr.msra.gmra.mxu0 %vm314_vm8, %v313_v3 }
 0x117   : > { %v334_v11 = vpop.f32.mrf.mxu0 }
 0x118   : > { %v335_v14 = vadd.f32 %v334_v11, %v274_v10 }
 0x11a   : > { %v337_v15 = vmax.f32 %v335_v14, 0.0 }
 0x11c   : > { %516 = vmatmul.msk.f32.vlgmr.msra.gmra.mxu1 %vm343_vm9, %v337_v15 }
 0x199   : > { %v364_v20 = vpop.f32.mrf.mxu1 }
 0x19a   : > { %v365_v21 = vadd.f32 %v364_v20, %v342_v19 }
 0x19c   : > { %v517_v22 = vmul.f32 -1.442695, %v365_v21 }
 0x19e   : > { %539 = vpow2.f32 %v517_v22 }
 0x1a4   : > { %v540_v23 = vpop.eup %539 }
 0x1a5   : > { %v370_v24 = vadd.f32 1.0, %v540_v23 }
 0x1a7   : > { %541 = vrcp.f32 %v370_v24  ;;  %v382_v25 = vand.u32 2147483648, %v370_v24  ;;  %v380_v30 = vand.u32 2147483647, %v370_v24  ;;  %vm376_vm11 = vweird.f32 %v370_v24 }
 0x1a9   : > { %v383_v32 = vor.u32 1.1754944e-38, %v382_v25  ;;  %vm381_vm13 = vcmp.eq.f32.partialorder %v380_v30, 8.507059e+37 }
 0x1ad   : > { %v542_v26 = vpop.eup %541 }
 0x1ae   : > { %v372_v27 = vmul.f32 %v542_v26, %v370_v24  ;;  %vm377_vm10 = vweird.f32 %v542_v26 }
 0x1af   : > { %vm378_vm12 = vmor %vm376_vm11, %vm377_vm10 }
 0x1b0   : > { %v373_v28 = vsub.f32 1.0, %v372_v27 }
 0x1b2   : > { %v374_v29 = vmul.f32 %v542_v26, %v373_v28 }
 0x1b4   : > { %v375_v31 = vadd.f32 %v542_v26, %v374_v29 }
 0x1b6   : > { %v379_v33 = vsel %vm378_vm12, %v542_v26, %v375_v31 }
 0x1b7   : > { %v384_v34 = vsel %vm381_vm13, %v383_v32, %v379_v33 }
 0x1b8   : > { %v386_v35 = vperm.slane %v384_v34, 0 }
 0x1ba   : > { %403 = vperm.xlu1 %532, %v386_v35   ;;  %397 = vperm.xlu0 %531, %v386_v35  }
 0x1bb   : > { %391 = vperm.xlu2 %530, %v386_v35  }
 0x1c2   : > { %535 = vset.pattern.permute.xlu1 %v419_v36  ;;  %538 = vset.pattern.permute.xlu0 %v431_v38 }
 0x1c3   : > { %533 = vset.pattern.permute.xlu2 %v407_v37 }
 0x1ca   : > { %421 = vperm.xlu1 %535, %v386_v35  }
 0x1cb   : > { %409 = vperm.xlu2 %533, %v386_v35  }
 0x1d2   : > { %537 = vset.pattern.permute.xlu1 %v431_v38 }
 0x1d3   : > { %534 = vset.pattern.permute.xlu2 %v413_v39 }
 0x1da   : > { %433 = vperm.xlu1 %537, %v386_v35  }
 0x1db   : > { %415 = vperm.xlu2 %534, %v386_v35  }
 0x1e3   : > { %536 = vset.pattern.permute.xlu2 %v425_v40 }
 0x1eb   : > { %427 = vperm.xlu2 %536, %v386_v35  }
 0x215   : > { %v392_v41 = vpop.permute.xlu2 %391 }
 0x216   : > { %v435_v42 = vmul.f32 %v392_v41, %v597_v0 }
 0x218   : > { %443 = vst.msk [vmem:[%s224_s7] sm:$0xff] %vm233_vm0, %v435_v42 }
 0x225   : > { %v410_v43 = vpop.permute.xlu2 %409 }
 0x226   : > { %v438_v44 = vmul.f32 %v410_v43, %v611_v7 }
 0x228   : > { %446 = vst.msk [vmem:[%s224_s7 + $0x18] sm:$0xff] %vm233_vm0, %v438_v44 }
 0x22c   : > { %v404_v45 = vpop.permute.xlu1 %403  ;;  %v398_v46 = vpop.permute.xlu0 %397 }
 0x22d   : > { %v437_v47 = vmul.f32 %v404_v45, %v599_v1  ;;  %v436_v48 = vmul.f32 %v398_v46, %v609_v6 }
 0x22f   : > { %445 = vst.msk [vmem:[%s224_s7 + $0x10] sm:$0xff] %vm233_vm0, %v437_v47 }
 0x230   : > { %444 = vst.msk [vmem:[%s224_s7 + $0x8] sm:$0xff] %vm233_vm0, %v436_v48 }
 0x235   : > { %v416_v49 = vpop.permute.xlu2 %415 }
 0x236   : > { %v439_v0 = vmul.f32 %v416_v49, %v601_v2 }
 0x238   : > { %447 = vst.msk [vmem:[%s224_s7 + $0x20] sm:$0xff] %vm233_vm0, %v439_v0 }
 0x23c   : > { %v422_v50 = vpop.permute.xlu1 %421 }
 0x23d   : > { %v440_v7 = vmul.f32 %v422_v50, %v613_v8 }
 0x23f   : > { %448 = vst.msk [vmem:[%s224_s7 + $0x28] sm:$0xff] %vm233_vm0, %v440_v7 }
 0x245   : > { %v428_v51 = vpop.permute.xlu2 %427 }
 0x246   : > { %v441_v52 = vmul.f32 %v428_v51, %v621_v12 }
 0x248   : > { %449 = vst.msk [vmem:[%s224_s7 + $0x30] sm:$0xff] %vm233_vm0, %v441_v52 }
 0x24c   : > { %v434_v1 = vpop.permute.xlu1 %433 }
 0x24d   : > { %v442_v6 = vmul.f32 %v434_v1, %v623_v13 }
 0x24f   : > { %450 = vst.msk [vmem:[%s224_s7 + $0x38] sm:$0xff] %vm233_vm0, %v442_v6 }
 0x250 PF: > { %s15_s18 = sadd.s32 1, %s549_s18  }
 0x251   : > { %p12_p4 = scmp.ge.s32.totalorder %s15_s18, 4  }
 0x253   :  { %14 = sbr.rel (!%p12_p4) target bundleno = 1 (0x1), region = 70 }

</bundles_post_ra>
